<compile_context>
chip_gen: v5e
topology: v5e:2x2
jax: 0.10.0
libtpu: 0.0.40
codegen_flags: <defaults>
</compile_context>

<pallas_src>
import functools

import jax
import jax.numpy as jnp
from jax import lax
from jax.experimental import pallas as pl
from jax.experimental.pallas import tpu as pltpu


def _fused_conv3_kernel(x_ref, w1_ref, b1_ref, w2_ref, b2_ref, w3_ref, b3_ref,
                        o_ref, pad_ref, *, b_block, hist_len, seg, pad_left,
                        ksizes):
    """x_ref:  (B_block, C_in, hist_len)
       wN_ref: (C_outN, C_inN * K_N)   — tap index folded into contraction dim
       bN_ref: (C_outN, 1)
       o_ref:  (C3, B_block * seg)     — dense full-width store
       pad_ref: VMEM scratch (C_in, B_block * seg) — padded layer-1 input."""
    # In-kernel zero padding: each batch element owns a stride-`seg` segment of
    # the lane axis; its data sits at [pad_left, pad_left + hist_len).
    pad_ref[...] = jnp.zeros_like(pad_ref)
    for b in range(b_block):                      # static, b_block <= 8
        start = b * seg + pad_left
        pad_ref[:, start:start + hist_len] = x_ref[b]

    def conv_relu(h, w_ref, b_ref, ksz):
        w_in = h.shape[1]
        w_out = w_in - (ksz - 1)
        # im2col: rows ordered k-major (matches the wrapper's weight
        # flattening), then ONE MXU matmul per layer instead of K tiny ones.
        cols = jnp.concatenate([h[:, k:k + w_out] for k in range(ksz)], axis=0)
        out = jnp.dot(w_ref[...], cols, preferred_element_type=jnp.float32)
        return jnp.maximum(out + b_ref[...], 0.0)

    # Segment offsets (b*seg) are preserved through every layer.  Columns past
    # a segment's valid length are garbage, but later layers' valid windows
    # never read them and the wrapper slices them away.
    h = pad_ref[...]
    h = conv_relu(h, w1_ref, b1_ref, ksizes[0])
    h = conv_relu(h, w2_ref, b2_ref, ksizes[1])
    h = conv_relu(h, w3_ref, b3_ref, ksizes[2])

    # Dense full-width store (pad the few tail columns with zeros).
    tail = o_ref.shape[-1] - h.shape[-1]
    if tail:
        h = jnp.concatenate([h, jnp.zeros((h.shape[0], tail), h.dtype)], axis=1)
    o_ref[...] = h.astype(o_ref.dtype)


def historical_conv3_relu(x, w1, b1, w2, b2, w3, b3, *, pad1=2, b_block=None):
    """x: (N, C_in, hist_len) -> (N, C_out, L3). Fused 3x(conv1d+ReLU)."""
    n, c_in, hist_len = x.shape
    c1, _, k1 = w1.shape
    c2, _, k2 = w2.shape
    c3, _, k3 = w3.shape
    seg = hist_len + 2 * pad1                       # per-batch segment stride
    l3 = seg - (k1 - 1) - (k2 - 1) - (k3 - 1)       # final valid length

    # Batch blocking: amortize per-grid-step overhead but keep >= 2 grid steps
    # for v7x's two TensorCores.
    if b_block is None:
        b_block = max(1, min(8, n // 2)) if n > 1 else 1
    nblk = pl.cdiv(n, b_block)
    n_pad = nblk * b_block
    if n_pad != n:
        x = jnp.concatenate(
            [x, jnp.zeros((n_pad - n, c_in, hist_len), x.dtype)], axis=0)

    # Pre-flatten weights to (C_out, K*C_in) (k-major) so each layer is one
    # matmul and no lane-axis tap-select happens inside the kernel.
    w1f = jnp.transpose(w1, (0, 2, 1)).reshape(c1, k1 * c_in)
    w2f = jnp.transpose(w2, (0, 2, 1)).reshape(c2, k2 * c1)
    w3f = jnp.transpose(w3, (0, 2, 1)).reshape(c3, k3 * c2)
    b1c = b1.reshape(c1, 1).astype(jnp.float32)
    b2c = b2.reshape(c2, 1).astype(jnp.float32)
    b3c = b3.reshape(c3, 1).astype(jnp.float32)

    kernel = functools.partial(
        _fused_conv3_kernel, b_block=b_block, hist_len=hist_len, seg=seg,
        pad_left=pad1, ksizes=(k1, k2, k3))

    out = pl.pallas_call(
        kernel,
        out_shape=jax.ShapeDtypeStruct((nblk, c3, b_block * seg), x.dtype),
        grid_spec=pltpu.PrefetchScalarGridSpec(
            num_scalar_prefetch=0,
            grid=(nblk,),
            in_specs=[
                pl.BlockSpec((b_block, c_in, hist_len), lambda i: (i, 0, 0)),
                pl.BlockSpec((c1, k1 * c_in), lambda i: (0, 0)),
                pl.BlockSpec((c1, 1), lambda i: (0, 0)),
                pl.BlockSpec((c2, k2 * c1), lambda i: (0, 0)),
                pl.BlockSpec((c2, 1), lambda i: (0, 0)),
                pl.BlockSpec((c3, k3 * c2), lambda i: (0, 0)),
                pl.BlockSpec((c3, 1), lambda i: (0, 0)),
            ],
            out_specs=pl.BlockSpec((pl.Squeezed(), c3, b_block * seg),
                                   lambda i: (i, 0, 0)),
            scratch_shapes=[pltpu.VMEM((c_in, b_block * seg), jnp.float32)],
        ),
        compiler_params=pltpu.CompilerParams(
            dimension_semantics=("parallel",)),
    )(x, w1f, b1c, w2f, b2c, w3f, b3c)

    # Layout plumbing: (NBLK, C3, B*seg) -> (N, C3, L3).
    out = out.reshape(nblk, c3, b_block, seg)
    out = jnp.transpose(out, (0, 2, 1, 3)).reshape(n_pad, c3, seg)
    return out[:n, :, :l3]


class HistoricalConv1DPallas:
    """Pallas port of HistoricalConv1D: 3 x (Conv1d + ReLU), fused in one kernel."""

    def __init__(self, in_channels, out_channel, hist_len, kernel_size=3, key=None):
        self.in_channels = in_channels
        self.out_channel = out_channel
        self.hist_len = hist_len
        self.kernel_size = kernel_size
        key = jax.random.PRNGKey(0) if key is None else key
        ks = jax.random.split(key, 6)

        c1_out = in_channels // 2
        c2_out = in_channels // 2 // 2

        def xavier_normal(k, shape):
            # shape = (C_out, C_in, K); fan_in = C_in*K, fan_out = C_out*K
            fan_in = shape[1] * shape[2]
            fan_out = shape[0] * shape[2]
            std = (2.0 / (fan_in + fan_out)) ** 0.5
            return std * jax.random.normal(k, shape, jnp.float32)

        def bias_init(k, c_out, c_in, ksz):
            bound = 1.0 / ((c_in * ksz) ** 0.5)
            return jax.random.uniform(k, (c_out,), jnp.float32, -bound, bound)

        self.w1 = xavier_normal(ks[0], (c1_out, in_channels, kernel_size))
        self.b1 = bias_init(ks[1], c1_out, in_channels, kernel_size)
        self.w2 = xavier_normal(ks[2], (c2_out, c1_out, kernel_size * 2))
        self.b2 = bias_init(ks[3], c2_out, c1_out, kernel_size * 2)
        self.w3 = xavier_normal(ks[4], (out_channel, c2_out, kernel_size))
        self.b3 = bias_init(ks[5], out_channel, c2_out, kernel_size)

    def __call__(self, x):
        return historical_conv3_relu(x, self.w1, self.b1, self.w2, self.b2,
                                     self.w3, self.b3, pad1=2)


def _ref_conv1d_relu(x, w, b, padding):
    out = lax.conv_general_dilated(
        x, w, window_strides=(1,), padding=[(padding, padding)],
        dimension_numbers=("NCH", "OIH", "NCH"))
    return jnp.maximum(out + b[None, :, None], 0.0)


if __name__ == "__main__":
    batch, in_channels, out_channel, hist_len = 2, 8, 4, 16
    key = jax.random.PRNGKey(0)
    k_x, k_p = jax.random.split(key)
    x = jax.random.normal(k_x, (batch, in_channels, hist_len), jnp.float32)

    model = HistoricalConv1DPallas(in_channels, out_channel, hist_len,
                                   kernel_size=3, key=k_p)
    forward = jax.jit(model.__call__)
    out = jax.block_until_ready(forward(x))

    # Pure-JAX reference check.
    r1 = _ref_conv1d_relu(x, model.w1, model.b1, 2)
    r2 = _ref_conv1d_relu(r1, model.w2, model.b2, 0)
    r3 = _ref_conv1d_relu(r2, model.w3, model.b3, 0)
    assert out.shape == (batch, out_channel, 11), out.shape
    assert jnp.allclose(out, r3, atol=1e-4, rtol=1e-4), \
        float(jnp.max(jnp.abs(out - r3)))

    print("KERNEL_OK")
</pallas_src>

<mosaic_0001>
module attributes {stable_mosaic.version = 11 : i64} {
  func.func @_fused_conv3_kernel(%arg0: i32, %arg1: memref<1x8x16xf32, #tpu.memory_space<vmem>>, %arg2: memref<4x24xf32, #tpu.memory_space<vmem>>, %arg3: memref<4x1xf32, #tpu.memory_space<vmem>>, %arg4: memref<2x24xf32, #tpu.memory_space<vmem>>, %arg5: memref<2x1xf32, #tpu.memory_space<vmem>>, %arg6: memref<4x6xf32, #tpu.memory_space<vmem>>, %arg7: memref<4x1xf32, #tpu.memory_space<vmem>>, %arg8: memref<1x4x20xf32, #tpu.memory_space<vmem>>, %arg9: memref<8x20xf32, #tpu.memory_space<vmem>>) attributes {dimension_semantics = [#tpu.dimension_semantics<parallel>], iteration_bounds = array<i64: 2>, scalar_prefetch = 0 : i64, scratch_operands = 1 : i64, tpu.core_type = #tpu.core_type<tc>, window_params = [{transform_indices = @transform_0, window_bounds = array<i64: 1, 8, 16>}, {pipeline_mode = #tpu.pipeline_mode<synchronous>, transform_indices = @transform_1, window_bounds = array<i64: 4, 24>}, {pipeline_mode = #tpu.pipeline_mode<synchronous>, transform_indices = @transform_2, window_bounds = array<i64: 4, 1>}, {pipeline_mode = #tpu.pipeline_mode<synchronous>, transform_indices = @transform_3, window_bounds = array<i64: 2, 24>}, {pipeline_mode = #tpu.pipeline_mode<synchronous>, transform_indices = @transform_4, window_bounds = array<i64: 2, 1>}, {pipeline_mode = #tpu.pipeline_mode<synchronous>, transform_indices = @transform_5, window_bounds = array<i64: 4, 6>}, {pipeline_mode = #tpu.pipeline_mode<synchronous>, transform_indices = @transform_6, window_bounds = array<i64: 4, 1>}, {transform_indices = @transform_7, window_bounds = array<i64: 1, 4, 20>}]} {
    %cst = arith.constant 0.000000e+00 : f32
    %0 = vector.broadcast %cst : f32 to vector<8x20xf32>
    %c0 = arith.constant 0 : index
    %c0_0 = arith.constant 0 : index
    %1 = vector.load %arg9[%c0, %c0_0] : memref<8x20xf32, #tpu.memory_space<vmem>>, vector<8x20xf32>
    tpu.vector_store %arg9[%c0, %c0_0], %0 {strides = array<i32>} : memref<8x20xf32, #tpu.memory_space<vmem>>, vector<8x20xf32>,
    %c0_1 = arith.constant 0 : index
    %c0_2 = arith.constant 0 : index
    %c0_3 = arith.constant 0 : index
    %2 = vector.load %arg1[%c0_1, %c0_2, %c0_3] : memref<1x8x16xf32, #tpu.memory_space<vmem>>, vector<1x8x16xf32>
    %3 = vector.shape_cast %2 : vector<1x8x16xf32> to vector<8x16xf32>
    %c0_4 = arith.constant 0 : index
    %c2 = arith.constant 2 : index
    %4 = vector.load %arg9[%c0_4, %c2] : memref<8x20xf32, #tpu.memory_space<vmem>>, vector<8x16xf32>
    tpu.vector_store %arg9[%c0_4, %c2], %3 {strides = array<i32>} : memref<8x20xf32, #tpu.memory_space<vmem>>, vector<8x16xf32>,
    %c0_5 = arith.constant 0 : index
    %c0_6 = arith.constant 0 : index
    %5 = vector.load %arg9[%c0_5, %c0_6] : memref<8x20xf32, #tpu.memory_space<vmem>>, vector<8x20xf32>
    %6 = vector.extract_strided_slice %5 {offsets = [0, 0], sizes = [8, 18], strides = [1, 1]} : vector<8x20xf32> to vector<8x18xf32>
    %7 = vector.extract_strided_slice %5 {offsets = [0, 1], sizes = [8, 18], strides = [1, 1]} : vector<8x20xf32> to vector<8x18xf32>
    %8 = vector.extract_strided_slice %5 {offsets = [0, 2], sizes = [8, 18], strides = [1, 1]} : vector<8x20xf32> to vector<8x18xf32>
    %9 = tpu.concatenate %6, %7, %8 in 0 : vector<8x18xf32>, vector<8x18xf32>, vector<8x18xf32> -> vector<24x18xf32>
    %c0_7 = arith.constant 0 : index
    %c0_8 = arith.constant 0 : index
    %10 = vector.load %arg2[%c0_7, %c0_8] : memref<4x24xf32, #tpu.memory_space<vmem>>, vector<4x24xf32>
    %cst_9 = arith.constant dense<0.000000e+00> : vector<4x18xf32>
    %11 = tpu.matmul %10, %9, %cst_9 {dimension_numbers = #tpu.dot_dimension_numbers<[1], [0], [0], [1], [0, 0, 1, 1], [], []>} : vector<4x24xf32>, vector<24x18xf32>, vector<4x18xf32> -> vector<4x18xf32>
    %c0_10 = arith.constant 0 : index
    %c0_11 = arith.constant 0 : index
    %12 = vector.load %arg3[%c0_10, %c0_11] : memref<4x1xf32, #tpu.memory_space<vmem>>, vector<4x1xf32>
    %13 = vector.broadcast %12 : vector<4x1xf32> to vector<4x18xf32>
    %14 = arith.addf %11, %13 : vector<4x18xf32>
    %cst_12 = arith.constant 0.000000e+00 : f32
    %15 = vector.broadcast %cst_12 : f32 to vector<4x18xf32>
    %16 = arith.maximumf %14, %15 : vector<4x18xf32>
    %17 = vector.extract_strided_slice %16 {offsets = [0, 0], sizes = [4, 13], strides = [1, 1]} : vector<4x18xf32> to vector<4x13xf32>
    %18 = vector.extract_strided_slice %16 {offsets = [0, 1], sizes = [4, 13], strides = [1, 1]} : vector<4x18xf32> to vector<4x13xf32>
    %19 = vector.extract_strided_slice %16 {offsets = [0, 2], sizes = [4, 13], strides = [1, 1]} : vector<4x18xf32> to vector<4x13xf32>
    %20 = vector.extract_strided_slice %16 {offsets = [0, 3], sizes = [4, 13], strides = [1, 1]} : vector<4x18xf32> to vector<4x13xf32>
    %21 = vector.extract_strided_slice %16 {offsets = [0, 4], sizes = [4, 13], strides = [1, 1]} : vector<4x18xf32> to vector<4x13xf32>
    %22 = vector.extract_strided_slice %16 {offsets = [0, 5], sizes = [4, 13], strides = [1, 1]} : vector<4x18xf32> to vector<4x13xf32>
    %23 = tpu.concatenate %17, %18, %19, %20, %21, %22 in 0 : vector<4x13xf32>, vector<4x13xf32>, vector<4x13xf32>, vector<4x13xf32>, vector<4x13xf32>, vector<4x13xf32> -> vector<24x13xf32>
    %c0_13 = arith.constant 0 : index
    %c0_14 = arith.constant 0 : index
    %24 = vector.load %arg4[%c0_13, %c0_14] : memref<2x24xf32, #tpu.memory_space<vmem>>, vector<2x24xf32>
    %cst_15 = arith.constant dense<0.000000e+00> : vector<2x13xf32>
    %25 = tpu.matmul %24, %23, %cst_15 {dimension_numbers = #tpu.dot_dimension_numbers<[1], [0], [0], [1], [0, 0, 1, 1], [], []>} : vector<2x24xf32>, vector<24x13xf32>, vector<2x13xf32> -> vector<2x13xf32>
    %c0_16 = arith.constant 0 : index
    %c0_17 = arith.constant 0 : index
    %26 = vector.load %arg5[%c0_16, %c0_17] : memref<2x1xf32, #tpu.memory_space<vmem>>, vector<2x1xf32>
    %27 = vector.broadcast %26 : vector<2x1xf32> to vector<2x13xf32>
    %28 = arith.addf %25, %27 : vector<2x13xf32>
    %cst_18 = arith.constant 0.000000e+00 : f32
    %29 = vector.broadcast %cst_18 : f32 to vector<2x13xf32>
    %30 = arith.maximumf %28, %29 : vector<2x13xf32>
    %31 = vector.extract_strided_slice %30 {offsets = [0, 0], sizes = [2, 11], strides = [1, 1]} : vector<2x13xf32> to vector<2x11xf32>
    %32 = vector.extract_strided_slice %30 {offsets = [0, 1], sizes = [2, 11], strides = [1, 1]} : vector<2x13xf32> to vector<2x11xf32>
    %33 = vector.extract_strided_slice %30 {offsets = [0, 2], sizes = [2, 11], strides = [1, 1]} : vector<2x13xf32> to vector<2x11xf32>
    %34 = tpu.concatenate %31, %32, %33 in 0 : vector<2x11xf32>, vector<2x11xf32>, vector<2x11xf32> -> vector<6x11xf32>
    %c0_19 = arith.constant 0 : index
    %c0_20 = arith.constant 0 : index
    %35 = vector.load %arg6[%c0_19, %c0_20] : memref<4x6xf32, #tpu.memory_space<vmem>>, vector<4x6xf32>
    %cst_21 = arith.constant dense<0.000000e+00> : vector<4x11xf32>
    %36 = tpu.matmul %35, %34, %cst_21 {dimension_numbers = #tpu.dot_dimension_numbers<[1], [0], [0], [1], [0, 0, 1, 1], [], []>} : vector<4x6xf32>, vector<6x11xf32>, vector<4x11xf32> -> vector<4x11xf32>
    %c0_22 = arith.constant 0 : index
    %c0_23 = arith.constant 0 : index
    %37 = vector.load %arg7[%c0_22, %c0_23] : memref<4x1xf32, #tpu.memory_space<vmem>>, vector<4x1xf32>
    %38 = vector.broadcast %37 : vector<4x1xf32> to vector<4x11xf32>
    %39 = arith.addf %36, %38 : vector<4x11xf32>
    %cst_24 = arith.constant 0.000000e+00 : f32
    %40 = vector.broadcast %cst_24 : f32 to vector<4x11xf32>
    %41 = arith.maximumf %39, %40 : vector<4x11xf32>
    %cst_25 = arith.constant 0.000000e+00 : f32
    %42 = vector.broadcast %cst_25 : f32 to vector<4x9xf32>
    %43 = tpu.concatenate %41, %42 in 1 : vector<4x11xf32>, vector<4x9xf32> -> vector<4x20xf32>
    %c0_26 = arith.constant 0 : index
    %c0_27 = arith.constant 0 : index
    %c0_28 = arith.constant 0 : index
    %44 = vector.load %arg8[%c0_26, %c0_27, %c0_28] : memref<1x4x20xf32, #tpu.memory_space<vmem>>, vector<1x4x20xf32>
    %45 = vector.shape_cast %44 : vector<1x4x20xf32> to vector<4x20xf32>
    %46 = vector.shape_cast %43 : vector<4x20xf32> to vector<1x4x20xf32>
    tpu.vector_store %arg8[%c0_26, %c0_27, %c0_28], %46 {strides = array<i32>} : memref<1x4x20xf32, #tpu.memory_space<vmem>>, vector<1x4x20xf32>,
    return
  }
  func.func @transform_0(%arg0: i32) -> (i32, i32, i32) {
    %c0_i32 = arith.constant 0 : i32
    %c0_i32_0 = arith.constant 0 : i32
    %c0_i32_1 = arith.constant 0 : i32
    return %arg0, %c0_i32, %c0_i32_0 : i32, i32, i32
  }
  func.func @transform_1(%arg0: i32) -> (i32, i32) {
    %c0_i32 = arith.constant 0 : i32
    %c0_i32_0 = arith.constant 0 : i32
    %c0_i32_1 = arith.constant 0 : i32
    return %c0_i32, %c0_i32_0 : i32, i32
  }
  func.func @transform_2(%arg0: i32) -> (i32, i32) {
    %c0_i32 = arith.constant 0 : i32
    %c0_i32_0 = arith.constant 0 : i32
    %c0_i32_1 = arith.constant 0 : i32
    return %c0_i32, %c0_i32_0 : i32, i32
  }
  func.func @transform_3(%arg0: i32) -> (i32, i32) {
    %c0_i32 = arith.constant 0 : i32
    %c0_i32_0 = arith.constant 0 : i32
    %c0_i32_1 = arith.constant 0 : i32
    return %c0_i32, %c0_i32_0 : i32, i32
  }
  func.func @transform_4(%arg0: i32) -> (i32, i32) {
    %c0_i32 = arith.constant 0 : i32
    %c0_i32_0 = arith.constant 0 : i32
    %c0_i32_1 = arith.constant 0 : i32
    return %c0_i32, %c0_i32_0 : i32, i32
  }
  func.func @transform_5(%arg0: i32) -> (i32, i32) {
    %c0_i32 = arith.constant 0 : i32
    %c0_i32_0 = arith.constant 0 : i32
    %c0_i32_1 = arith.constant 0 : i32
    return %c0_i32, %c0_i32_0 : i32, i32
  }
  func.func @transform_6(%arg0: i32) -> (i32, i32) {
    %c0_i32 = arith.constant 0 : i32
    %c0_i32_0 = arith.constant 0 : i32
    %c0_i32_1 = arith.constant 0 : i32
    return %c0_i32, %c0_i32_0 : i32, i32
  }
  func.func @transform_7(%arg0: i32) -> (i32, i32, i32) {
    %c0_i32 = arith.constant 0 : i32
    %c0_i32_0 = arith.constant 0 : i32
    %c0_i32_1 = arith.constant 0 : i32
    return %arg0, %c0_i32, %c0_i32_0 : i32, i32, i32
  }
}

</mosaic_0001>

<bundles_post_ra>
// kernel: a_call__.1
= control target key start
LH: loop header
LB: loop body
LE: loop exit
PB: predicated region body
PF: predicated region fallthrough
CT: control target
= control target key end

     0   :  { %s1288_s0 = inlined_call_operand.hbm [shape: f32[2,8,16], index: 0, kind: input, shape index: {}]   ;;  %s1289_s1 = inlined_call_operand.hbm [shape: f32[4,24], index: 1, kind: input, shape index: {}]   ;;  %s1290_s2 = inlined_call_operand.hbm [shape: f32[4,1], index: 2, kind: input, shape index: {}]   ;;  %s1291_s3 = inlined_call_operand.hbm [shape: f32[2,24], index: 3, kind: input, shape index: {}]   ;;  %s1292_s4 = inlined_call_operand.hbm [shape: f32[2,1], index: 4, kind: input, shape index: {}]   ;;  %s1293_s5 = inlined_call_operand.hbm [shape: f32[4,6], index: 5, kind: input, shape index: {}]   ;;  %s1294_s6 = inlined_call_operand.vmem [shape: f32[4,1], index: 6, kind: input, shape index: {}]   ;;  %s1295_s7 = inlined_call_operand.hbm [shape: f32[2,4,20], index: 7, kind: output, shape index: {}]  }
   0x1   :  { %1296 = sst [smem:[#allocation20_spill]] %s1289_s1 }
   0x2   :  { %12 = vsyncpa [#allocation4], 0 }
   0x3   :  { %14 = vsyncpa [#allocation4 + $0x1], 0 }
   0x4   :  { %15 = vsyncpa [#allocation7], 0 }
   0x5   :  { %16 = vsyncpa [#allocation10], 0 }
   0x6   :  { %17 = vsyncpa [#allocation13], 0 }
   0x7   :  { %18 = vsyncpa [#allocation5], 0 }
   0x8   :  { %20 = vsyncpa [#allocation5 + $0x1], 0  ;;  %s1102_s24 = smov 0   ;;  %s1104_s25 = smov 0  }
   0x9   :  { %s1106_s26 = smov 0   ;;  %s1108_s27 = smov 0  }
   0xa LB: > { %s1297_s1 = sld [smem:[#allocation20_spill]]  ;;  %s1126_s8 = sadd.s32 4294967295, %s1047_s27   ;;  %s1047_s27 = sphi %s1108_s27, %s1308_s27   ;;  %s1043_s26 = sphi %s1106_s26, %s1307_s26   ;;  %s1039_s25 = sphi %s1104_s25, %s1306_s25   ;;  %s1035_s24 = sphi %s1102_s24, %s1305_s24  }
   0xb   : > { %p657_p0 = scmp.ge.s32.totalorder %s1047_s27, 1  ;;  %p47_p1 = scmp.eq.s32.totalorder %s1126_s8, 0 }
   0xc   : > { %p209_p2 = scmp.lt.s32.totalorder %s1047_s27, 3  ;;  %s1049_s10 = smov [#allocation6]  }
   0xd   : > { %s223_s11 = sshll.u32 %s1049_s10, 4  ;;  %s245_s14 = sshll.u32 %s1291_s3, 4  ;;  %s224_s11 = int_to_ptr.vmem [resolvable:$true] %s223_s11  ;;  %s246_s14 = int_to_ptr.hbm [resolvable:$true] %s245_s14 }
   0xe   : > { %p1131_p3 = pnand %p657_p0, %p209_p2  ;;  %s1050_s16 = smov [#allocation9]  }
   0xf   : > { %s247_s17 = sshll.u32 %s1050_s16, 4  ;;  %s233_s20 = sshll.u32 %s1290_s2, 4  ;;  %s248_s17 = int_to_ptr.vmem [resolvable:$true] %s247_s17  ;;  %s234_s20 = int_to_ptr.hbm [resolvable:$true] %s233_s20 }
  0x10   : > { %s221_s30 = sshll.u32 %s1297_s1, 4  ;;  %p706_p5 = pneg %p1131_p3  ;;  %s222_s30 = int_to_ptr.hbm [resolvable:$true] %s221_s30 }
  0x11   : > { %s257_s23 = sshll.u32 %s1292_s4, 4  ;;  %s1051_s28 = smov [#allocation8]   ;;  %s258_s23 = int_to_ptr.hbm [resolvable:$true] %s257_s23 }
  0x12   : > { %p1143_p6 = pnand %p706_p5, %p47_p1  ;;  %s235_s29 = sshll.u32 %s1051_s28, 4  ;;  %s236_s29 = int_to_ptr.vmem [resolvable:$true] %s235_s29 }
  0x13   : > { %s269_s13 = sshll.u32 %s1293_s5, 4  ;;  %s1168_s18 = sadd.s32 1, %s1047_s27   ;;  %s270_s13 = int_to_ptr.hbm [resolvable:$true] %s269_s13 }
  0x14   : > { %709 = dma.hbm_to_vmem [thread:$0]  (!%p1143_p6), %s222_s30, 64, %s224_s11, [#allocation7]  }
  0x15   : > { %715 = dma.hbm_to_vmem [thread:$0]  (!%p1143_p6), %s246_s14, 32, %s248_s17, [#allocation10]  }
  0x16   : > { %712 = dma.hbm_to_vmem [thread:$0]  (!%p1143_p6), %s234_s20, 64, %s236_s29, [#allocation7]  }
  0x17   : > { %s1052_s30 = smov [#allocation11]   ;;  %s1053_s14 = smov [#allocation12]  }
  0x18   : > { %s259_s10 = sshll.u32 %s1052_s30, 4  ;;  %s271_s16 = sshll.u32 %s1053_s14, 4  ;;  %s260_s10 = int_to_ptr.vmem [resolvable:$true] %s259_s10  ;;  %s272_s16 = int_to_ptr.vmem [resolvable:$true] %s271_s16 }
  0x19   : > { %718 = dma.hbm_to_vmem [thread:$0]  (!%p1143_p6), %s258_s23, 32, %s260_s10, [#allocation10]  }
  0x1a   : > { %721 = dma.hbm_to_vmem [thread:$0]  (!%p1143_p6), %s270_s13, 64, %s272_s16, [#allocation13]  }
  0x1b   : > { %s656_s17 = sadd.s32 4294967294, %s1047_s27   ;;  %s33_s19 = sadd.s32 1, %s1043_s26 }
  0x1c   : > { %s30_s20 = ssub.s32 %s1047_s27, %s1168_s18  ;;  %p40_p7 = scmp.ne.s32.totalorder %s1043_s26, %s1039_s25 }
  0x1d   : > { %p31_p8 = scmp.eq.s32.totalorder %s30_s20, 0  ;;  %p41_p9 = scmp.eq.s32.totalorder %s1047_s27, 0 }
  0x1e   : > { %p46_p10 = scmp.ne.s32.totalorder %s1039_s25, %s1035_s24  ;;  %p196_p11 = scmp.eq.s32.totalorder %s1126_s8, 1 }
  0x1f   : > { %s1180_s21 = scalar_select %p31_p8, %s1043_s26, %s33_s19  }
  0x20   : > { %p1184_p12 = por %p47_p1, %p46_p10  ;;  %p1188_p13 = por %p196_p11, %p40_p7 }
  0x21   : > { %p202_p0 = scmp.eq.s32.totalorder %s656_s17, 1  ;;  %p42_p2 = por %p41_p9, %p40_p7 }
  0x22   : > { %s285_s23 = sand.u32 1, %s1043_s26   ;;  %p735_p6 = scmp.lt.s32.totalorder %s1047_s27, 2 }
  0x23   : > { %p1193_p5 = por %p202_p0, %p46_p10  ;;  %s664_s29 = sshll.u32 %s285_s23, 3 }
  0x24   : > { %s665_s30 = sshll.u32 %s1047_s27, 3  ;;  %s289_s14 = scalar_lea.vmem [#allocation3], %s664_s29 }
  0x25   : > { %s293_s12 = scalar_lea.hbm %s1288_s0, %s665_s30  ;;  %s297_s16 = sshll.u32 %s289_s14, 4  ;;  %s298_s16 = int_to_ptr.vmem [resolvable:$true] %s297_s16 }
  0x26   : > { %s295_s13 = sshll.u32 %s293_s12, 4  ;;  %p1202_p8 = pnand %p735_p6, %p42_p2  ;;  %s296_s13 = int_to_ptr.hbm [resolvable:$true] %s295_s13 }
  0x27   : > { %s286_s19 = scalar_lea.sflag [#allocation4], %s285_s23  ;;  %s939_s20 = sshra.s32 %s296_s13, 4  ;;  %s940_s20 = int_to_ptr.hbm [resolvable:$true] %s939_s20 }
  0x28   : > { %s941_s1 = scalar_lea.hbm %s940_s20, 8  ;;  %p943_p9 = pneg %p1202_p8 }
  0x29   : > { %p942_p7 = scmp.ne.s32.totalorder %s940_s20, %s941_s1  ;;  %s946_s29 = scalar_lea.hbm %s1288_s0, 16 }
  0x2a   : > { %p947_p0 = scmp.lt.s32.totalorder %s940_s20, %s1288_s0  ;;  %p948_p2 = scmp.lt.s32.totalorder %s946_s29, %s941_s1 }
  0x2b   : > { %p944_p10 = pnand %p943_p9, %p942_p7 }
  0x2c   : > { %p949_p6 = por %p948_p2, %p947_p0 }
  0x2d   : > { %p945_p11 = pneg %p944_p10 }
  0x2f   : > { %p950_p4 = pnand %p949_p6, %p945_p11 }
  0x31   : > { %953 = shalt.err (!%p950_p4)
}
  0x32   : > { %725 = dma.hbm_to_vmem [thread:$0]  (!%p1202_p8), %s296_s13, 128, %s298_s16, %s286_s19  }
  0x33   : > { %306 = sbr.rel (%p1131_p3) target bundleno = 948 (0x3b4), region = 48  ;;  %s1219_s23 = sand.u32 (!%p1131_p3), 1, %s1039_s25  }
  0x34   : > { %s667_s14 = sshll.u32 (!%p1131_p3), %s1219_s23, 3  ;;  %s309_s30 = scalar_lea.sflag (!%p1131_p3), [#allocation4], %s1219_s23 }
  0x35   : > { %s312_s10 = scalar_lea.vmem (!%p1131_p3), [#allocation3], %s667_s14 }
  0x38   : > { %1014 = dma.done.wait (%p1184_p12), %s309_s30, 128  }
  0x39   : > { %1016 = vsyncadd (%p1184_p12), %s309_s30, 4294967168 }
  0x3a   : > { %1018 = dma.done.wait (%p47_p1), [#allocation7], 128  }
  0x3b   : > { %1020 = vsyncadd (%p47_p1), [#allocation7], 4294967168 }
  0x3c   : > { %1022 = dma.done.wait (%p47_p1), [#allocation10], 64  }
  0x3d   : > { %1024 = vsyncadd (%p47_p1), [#allocation10], 4294967232 }
  0x3e   : > { %1026 = dma.done.wait (%p47_p1), [#allocation13], 64  }
  0x3f   : > { %1028 = vsyncadd (%p47_p1), [#allocation13], 4294967232  ;;  %vm369_vm0 = vcmask 162816   ;;  %v1054_v0 = vmov 0.0   ;;  %v371_v1 = vld [vmem:[%s312_s10] sm:$0xff]  ;;  %s1055_s1 = smov 2  }
  0x40   : > { %370 = vst.msk [vmem:[#allocation2] sm:$0xff] %vm369_vm0, %v1054_v0  ;;  %373 = vrot.lane.b32.xlu0 %v371_v1, %s1055_s1  ;;  %vm376_vm1 = vcmask 146448   ;;  %s1056_s9 = smov 127   ;;  %s1057_s15 = smov 126   ;;  %v387_v4 = vld [vmem:[#allocation8] sm:$0xf] }
  0x41   : > { %v1058_v5 = vmov 0   ;;  %v386_v8 = vld [vmem:[#allocation6] sm:$0xf]  ;;  %vm393_vm2 = vcmask 195584   ;;  %s1059_s13 = smov 124   ;;  %s1060_s16 = smov 125  }
  0x42   : > { %787 = vset.pattern.permute.xlu1 %v1058_v5  ;;  %788 = vset.pattern.permute.xlu0 %v1058_v5  ;;  %s1061_s17 = smov 123   ;;  %v440_v14 = vld [vmem:[#allocation11] sm:$0x3]  ;;  %vm435_vm3 = vcmask 1043456   ;;  %v439_v22 = vld [vmem:[#allocation9] sm:$0x3] }
  0x43   : > { %v483_v30 = vld [vmem:[%s1294_s6] sm:$0xf]  ;;  %vm479_vm4 = vcmask 1041408   ;;  %vm493_vm5 = vcmask 1045504   ;;  %v482_v34 = vld [vmem:[#allocation12] sm:$0xf] }
  0x44   : > { %vm489_vm6 = vcmask 48128   ;;  %s673_s29 = sshll.u32 %s1219_s23, 2  ;;  %s679_s11 = sshll.u32 %s1126_s8, 2  ;;  %vm518_vm7 = vcmask 89088   ;;  %vm520_vm8 = vcmask 158720  }
  0x45   : > { %s533_s30 = scalar_lea.hbm %s1295_s7, %s679_s11  ;;  %s368_s10 = scalar_lea.vmem [#allocation14], %s673_s29 }
  0x46   : > { %s535_s1 = sshll.u32 %s368_s10, 4  ;;  %s989_s19 = scalar_lea.hbm %s1295_s7, 8  ;;  %s536_s1 = int_to_ptr.vmem [resolvable:$true] %s535_s1 }
  0xb2   : > { %v374_v2 = vpop.permute.xlu0 %373 }
  0xb3   : > { %377 = vst.msk [vmem:[#allocation2] sm:$0xff] %vm376_vm1, %v374_v2 }
  0xba   : > { %v378_v3 = vld [vmem:[#allocation2] sm:$0xff] }
  0xbb   : > { %380 = vrot.lane.b32.xlu1 %v378_v3, %s1056_s9  ;;  %383 = vrot.lane.b32.xlu0 %v378_v3, %s1057_s15 }
  0xc3   : > { %390 = vperm.xlu1 %787, %v387_v4  }
 0x12d   : > { %v384_v6 = vpop.permute.xlu0 %383  ;;  %v381_v7 = vpop.permute.xlu1 %380 }
 0x12e   : > { %410 = vmatpush.msra.mxu0 %v384_v6 }
 0x130   : > { %411 = vmatpush.msra.mxu0 %v381_v7 }
 0x132   : > { %412 = vmatpush.msra.mxu0 %v378_v3 }
 0x133   : > { %674 = vmatmul.msk.f32.vlgmr.msra.gmra.mxu0 %vm393_vm2, %v386_v8 }
 0x135   : > { %v391_v9 = vpop.permute.xlu1 %390 }
 0x1b0   : > { %v414_v10 = vpop.f32.mrf.mxu0 }
 0x1b1   : > { %v415_v11 = vadd.f32 %v414_v10, %v391_v9 }
 0x1b3   : > { %v417_v12 = vmax.f32 %v415_v11, 0.0 }
 0x1b5   : > { %423 = vrot.lane.b32.xlu0 %v417_v12, %s1057_s15  ;;  %429 = vrot.lane.b32.xlu2 %v417_v12, %s1059_s13  ;;  %v419_v13 = vrot.slane %v417_v12, 4 }
 0x1b7   : > { %426 = vrot.lane.b32.xlu1 %v419_v13, %s1060_s16 }
 0x1bd   : > { %432 = vrot.lane.b32.xlu2 %v419_v13, %s1061_s17  ;;  %443 = vperm.xlu0 %788, %v440_v14  }
 0x1c5   : > { %420 = vrot.lane.b32.xlu2 %v419_v13, %s1056_s9 }
 0x20f   : > { %v430_v15 = vpop.permute.xlu2 %429 }
 0x217   : > { %v433_v16 = vpop.permute.xlu2 %432 }
 0x218   : > { %v438_v17 = vsel %vm435_vm3, %v430_v15, %v433_v16 }
 0x219   : > { %462 = vmatpush.msra.mxu1 %v438_v17 }
 0x21f   : > { %v421_v18 = vpop.permute.xlu2 %420 }
 0x220   : > { %v436_v23 = vsel %vm435_vm3, %v417_v12, %v421_v18 }
 0x227   : > { %v424_v19 = vpop.permute.xlu0 %423 }
 0x229   : > { %v427_v20 = vpop.permute.xlu1 %426 }
 0x22a   : > { %v437_v21 = vsel %vm435_vm3, %v424_v19, %v427_v20 }
 0x22b   : > { %463 = vmatpush.msra.mxu1 %v437_v21 }
 0x22d   : > { %464 = vmatpush.msra.mxu1 %v436_v23 }
 0x22e   : > { %675 = vmatmul.msk.f32.vlgmr.msra.gmra.mxu1 %vm393_vm2, %v439_v22 }
 0x22f   : > { %v444_v24 = vpop.permute.xlu0 %443 }
 0x2ab   : > { %v466_v25 = vpop.f32.mrf.mxu1 }
 0x2ac   : > { %v467_v26 = vadd.f32 %v466_v25, %v444_v24 }
 0x2ae   : > { %v469_v27 = vmax.f32 %v467_v26, 0.0 }
 0x2b0   : > { %v475_v28 = vrot.slane %v469_v27, 4  ;;  %v471_v29 = vrot.slane %v469_v27, 6 }
 0x2b2   : > { %476 = vrot.lane.b32.xlu2 %v475_v28, %s1057_s15  ;;  %472 = vrot.lane.b32.xlu1 %v471_v29, %s1056_s9  ;;  %s537_s9 = sshll.u32 %s533_s30, 4  ;;  %s523_s15 = scalar_lea.sflag [#allocation5], %s1219_s23  ;;  %s538_s9 = int_to_ptr.hbm [resolvable:$true] %s537_s9 }
 0x2b3   : > { %s983_s8 = sshra.s32 %s538_s9, 4  ;;  %s984_s8 = int_to_ptr.hbm [resolvable:$true] %s983_s8 }
 0x2b4   : > { %s985_s13 = scalar_lea.hbm %s984_s8, 4  ;;  %p990_p12 = scmp.lt.s32.totalorder %s984_s8, %s1295_s7 }
 0x2b5   : > { %p986_p1 = scmp.ne.s32.totalorder %s984_s8, %s985_s13  ;;  %p991_p8 = scmp.lt.s32.totalorder %s989_s19, %s985_s13 }
 0x2b7   : > { %p987_p3 = pnand %p986_p1, %p1188_p13  ;;  %p992_p7 = por %p991_p8, %p990_p12 }
 0x2b9   : > { %p988_p4 = pneg %p987_p3 }
 0x2ba   : > { %486 = vperm.xlu1 %787, %v483_v30  }
 0x2bb   : > { %p993_p9 = pnand %p992_p7, %p988_p4 }
 0x30c   : > { %v477_v32 = vpop.permute.xlu2 %476 }
 0x324   : > { %v473_v31 = vpop.permute.xlu1 %472 }
 0x325   : > { %v480_v33 = vsel %vm479_vm4, %v469_v27, %v473_v31 }
 0x326   : > { %v481_v35 = vsel %vm435_vm3, %v480_v33, %v477_v32 }
 0x327   : > { %676 = vmatpush.msk.msra.mxu2 %vm493_vm5, %v481_v35 }
 0x328   : > { %677 = vmatmul.msk.f32.vlgmr.msra.gmra.mxu2 %vm489_vm6, %v482_v34 }
 0x32c   : > { %v487_v36 = vpop.permute.xlu1 %486 }
 0x3ab   : > { %v514_v37 = vpop.f32.mrf.mxu2 }
 0x3ac   : > { %v515_v38 = vadd.f32 %v514_v37, %v487_v36 }
 0x3ae   : > { %v517_v39 = vmax.f32 %v515_v38, 0.0 }
 0x3b0   : > { %v519_v40 = vsel %vm518_vm7, %v517_v39, 0.0 }
 0x3b1   : > { %521 = vst.msk [vmem:[%s368_s10] sm:$0xf] %vm520_vm8, %v519_v40 }
 0x3b2   : > { %996 = shalt.err (!%p993_p9)
}
 0x3b3   : > { %704 = dma.vmem_to_hbm [thread:$0]  (%p1188_p13), %s536_s1, 64, %s538_s9, %s523_s15  }
 0x3b4 PF: > { %s549_s23 = sand.u32 1, %s1035_s24   ;;  %p1304_p10 = scmp.ge.s32.totalorder %s1047_s27, 2 }
 0x3b5   : > { %s550_s11 = scalar_lea.sflag [#allocation5], %s549_s23 }
 0x3b6   : > { %p727_p11 = pnand %p1304_p10, %p1193_p5 }
 0x3b8   : > { %p728_p0 = pneg %p727_p11 }
 0x3ba   : > { %1030 = dma.done.wait (%p728_p0), %s550_s11, 64  }
 0x3bb   : > { %1032 = vsyncadd (%p728_p0), %s550_s11, 4294967232  ;;  %p23_p2 = scmp.ge.s32.totalorder %s1168_s18, 4   ;;  %s1305_s24 = smov %s1039_s25 }
 0x3bc   : > { %s1306_s25 = smov %s1043_s26  ;;  %s1307_s26 = smov %s1180_s21 }
 0x3bd   : > { %s1308_s27 = smov %s1168_s18  ;;  %25 = sbr.rel (!%p23_p2) target bundleno = 10 (0xa), region = 113 }
 0x3c2   :  { %556 = vsyncpa [#allocation4], 1 }
 0x3c3   :  { %558 = vsyncpa [#allocation4 + $0x1], 1 }
 0x3c4   :  { %559 = vsyncpa [#allocation7], 1 }
 0x3c5   :  { %560 = vsyncpa [#allocation10], 1 }
 0x3c6   :  { %561 = vsyncpa [#allocation13], 1 }
 0x3c7   :  { %562 = vsyncpa [#allocation5], 1 }
 0x3c8   :  { %564 = vsyncpa [#allocation5 + $0x1], 1 }

</bundles_post_ra>
